<compile_context>
chip_gen: v6e
topology: v6e:2x2x1
jax: 0.10.0
libtpu: 0.0.40
codegen_flags: <defaults>
</compile_context>

<pallas_src>
import numpy as np
import jax
import jax.numpy as jnp
from jax.experimental import pallas as pl
from jax.experimental.pallas import tpu as pltpu

L2_REG = 0.02        # module default l2_reg=0.02
ANGLE_BOUND = 1.0    # module default angle_bound=1.0
# (lambda_ang=2 is stored in __init__ but never used in forward -> omitted)

NEG_BIG = -1e30      # finite mask fill; exp(NEG_BIG - t) underflows to exactly 0


def _round_up(x, m):
    return ((x + m - 1) // m) * m


def _make_angular_kernel(n_valid, tm, n_pad):
    """Kernel over one row-tile of anchors; the P bank stays resident."""

    def kernel(a_ref, p_ref, bank_ref, o_ref):
        i = pl.program_id(0)
        row0 = i * tm

        a = a_ref[...]                     # (tm, Dp)    native dtype
        p = p_ref[...]                     # (tm, Dp)    rows aligned with a
        bank = bank_ref[...]               # (n_pad, Dp) GEMM dtype

        # ---- single dense Gram GEMM on the MXU: x1[r, k] = (a_r + p_r) . p_k
        ap = (a + p).astype(bank.dtype)
        x1 = jax.lax.dot_general(
            ap, bank,
            dimension_numbers=(((1,), (1,)), ((), ())),
            preferred_element_type=jnp.float32)        # (tm, n_pad) f32

        # ---- small elementwise path in f32
        a32 = a.astype(jnp.float32)
        p32 = p.astype(jnp.float32)
        x2 = jnp.sum(a32 * p32, axis=-1, keepdims=True)          # (tm, 1)

        x = 4.0 * ANGLE_BOUND * x1 - 2.0 * (1.0 + ANGLE_BOUND) * x2

        # ---- mask: only real columns, and never k == i (the pair's own positive)
        # One full-size iota only; the row index broadcasts from (tm, 1).
        col = jax.lax.broadcasted_iota(jnp.int32, (tm, n_pad), 1)     # (tm, n_pad)
        col_in_range = col < n_valid                                  # grid-independent
        row = row0 + jax.lax.broadcasted_iota(jnp.int32, (tm, 1), 0)  # (tm, 1)
        x = jnp.where(col_in_range & (col != row), x, NEG_BIG)

        # ---- numerically stable log(1 + sum_k exp(x_k))
        # Clamping t >= 0 is algebraically identical to the PyTorch formula
        # (log(1 + sum exp(x))) but keeps exp(-t) bounded.  Masked entries
        # underflow to exactly 0 in exp(x - t), so no second select is needed.
        t = jnp.maximum(jnp.max(x, axis=1, keepdims=True), 0.0)       # (tm, 1)
        lse = jnp.log(jnp.exp(-t) + jnp.sum(jnp.exp(x - t), axis=1, keepdims=True))

        row_valid = row < n_valid                                     # (tm, 1)
        # Note: degenerate n == 1 yields a 0 angular term (PyTorch would error
        # on empty negatives).
        row_loss = jnp.where(row_valid, t + lse, 0.0)                 # (tm, 1)

        ang_partial = jnp.sum(row_loss)
        l2_partial = jnp.sum(a32 * a32 + p32 * p32)   # padded rows are zero

        # ---- lane-dense per-tile partial-sum output: lane 0 = ang, lane 1 = l2
        lane = jax.lax.broadcasted_iota(jnp.int32, (1, 1, 128), 2)
        o_ref[...] = jnp.where(
            lane == 0, ang_partial,
            jnp.where(lane == 1, l2_partial, 0.0)).astype(jnp.float32)

    return kernel


def angular_loss_pallas(anchors, positives, *, tm=None, bf16_gemm=None):
    """anchors, positives: (n, D). Returns the scalar AngularLoss forward value."""
    n, d = anchors.shape
    d_pad = _round_up(d, 128)                        # lane-aligned K
    itemsize = jnp.dtype(anchors.dtype).itemsize

    # Optional bf16 Gram GEMM: only worth it when the GEMM dominates the EUP
    # exp() work (d_pad >= 512).  f32 accumulation is kept either way.
    # TODO(synk): keep this off on v5e when strict f32 Gram precision matters.
    if bf16_gemm is None:
        bf16_gemm = (anchors.dtype == jnp.float32) and (d_pad >= 512)
    bank_dtype = jnp.bfloat16 if bf16_gemm else anchors.dtype
    bank_itemsize = jnp.dtype(bank_dtype).itemsize

    # Generation-aware VMEM budget (~80% of physical: ~51 MiB v7x, ~102 MiB v5e/v6e).
    try:
        vmem_cap = int(pltpu.get_tpu_info().vmem_capacity_bytes)
    except Exception:
        vmem_cap = 64 * 1024 * 1024
    budget = int(0.8 * vmem_cap)

    def needed(tm_, n_pad_):
        return (2 * tm_ * d_pad * itemsize        # anchor tile, double buffered
                + 2 * tm_ * d_pad * itemsize      # aligned positives tile, double buffered
                + n_pad_ * d_pad * bank_itemsize  # resident P bank, single buffered
                + 2 * 128 * 4                     # output tile, double buffered
                + 4 * tm_ * n_pad_ * 4            # f32 Gram / mask / exp temporaries
                + 6 * tm_ * d_pad * 4             # f32 elementwise temporaries
                + (2 << 20))                      # headroom

    if tm is None:
        # Fill the 256-wide MXU on v6e/v7x, but keep num_tiles >= 2 whenever n
        # allows so the "parallel" grid axis can split across v7x's two cores.
        tm = 256 if n > 256 else 128
        if tm == 256 and needed(256, _round_up(n, 256)) > budget:
            tm = 128
    n_pad = _round_up(n, tm)
    num_tiles = n_pad // tm

    need = needed(tm, n_pad)
    # TODO(synk): when 'need' exceeds the budget (very large n, esp. v7x's
    # 64 MiB VMEM), add a second "arbitrary" grid axis tiling the Gram's
    # column dimension with a flash-style running max/sum so the footprint
    # becomes O(tm * (d_pad + tn)), independent of n.
    vmem_limit = int(min(max(need, 4 * 1024 * 1024), budget))

    a_p = jnp.zeros((n_pad, d_pad), anchors.dtype).at[:n, :d].set(anchors)
    p_p = jnp.zeros((n_pad, d_pad), positives.dtype).at[:n, :d].set(positives)
    bank = p_p.astype(bank_dtype)

    kernel = _make_angular_kernel(n, tm, n_pad)

    def _call(single_buffer_bank):
        if single_buffer_bank:
            # Constant index_map -> fetched once; the default double buffer is
            # pure VMEM waste, so request a single buffer.
            bank_spec = pl.BlockSpec((n_pad, d_pad), lambda i: (0, 0),
                                     pipeline_mode=pl.Buffered(1))
        else:
            bank_spec = pl.BlockSpec((n_pad, d_pad), lambda i: (0, 0))
        return pl.pallas_call(
            kernel,
            out_shape=jax.ShapeDtypeStruct((num_tiles, 1, 128), jnp.float32),
            grid=(num_tiles,),
            in_specs=[
                pl.BlockSpec((tm, d_pad), lambda i: (i, 0)),   # anchor rows
                pl.BlockSpec((tm, d_pad), lambda i: (i, 0)),   # aligned positives
                bank_spec,                                     # resident P bank
            ],
            out_specs=pl.BlockSpec((1, 1, 128), lambda i: (i, 0, 0)),
            compiler_params=pltpu.CompilerParams(
                dimension_semantics=("parallel",),
                vmem_limit_bytes=vmem_limit,
            ),
        )(a_p, p_p, bank)

    try:
        partials = _call(True)
    except Exception:
        # Graceful fallback: let the pipeline double-buffer the constant bank.
        partials = _call(False)

    ang = jnp.sum(partials[:, 0, 0]) / n
    l2 = jnp.sum(partials[:, 0, 1]) / n
    return ang + L2_REG * l2


# ---------------- host-side glue (mirrors NPairLoss.get_n_pairs) ----------------
def get_n_pairs(labels, rng):
    labels = np.asarray(labels)
    n_pairs = []
    for label in np.unique(labels):
        label_indices = np.where(labels == label)[0]
        if len(label_indices) < 2:
            continue
        anchor, positive = rng.choice(label_indices, 2, replace=False)
        n_pairs.append([anchor, positive])
    n_pairs = np.array(n_pairs)
    n_negatives = []
    for i in range(len(n_pairs)):
        negative = np.concatenate([n_pairs[:i, 1], n_pairs[i + 1:, 1]])
        n_negatives.append(negative)
    n_negatives = np.array(n_negatives)
    return n_pairs, n_negatives


def angular_loss_reference(a, p, negs):
    """Pure-JAX reference identical to the PyTorch math (negatives materialized)."""
    x1 = jnp.einsum('nd,nkd->nk', a + p, negs)
    x2 = jnp.sum(a * p, axis=-1, keepdims=True)
    x = 4.0 * ANGLE_BOUND * x1 - 2.0 * (1.0 + ANGLE_BOUND) * x2
    t = jnp.max(x, axis=1)
    lse = jnp.log(jnp.exp(-t) + jnp.sum(jnp.exp(x - t[:, None]), axis=1))
    ang = jnp.mean(t + lse)
    l2 = jnp.sum(a ** 2 + p ** 2) / a.shape[0]
    return ang + L2_REG * l2


if __name__ == "__main__":
    key = jax.random.PRNGKey(0)
    batch, embed_dim = 8, 32
    embeddings = jax.random.normal(key, (batch, embed_dim), dtype=jnp.float32)
    labels = np.array([0, 0, 1, 1, 2, 2, 3, 3])  # 4 classes, 2 samples each

    rng = np.random.RandomState(0)               # deterministic pair sampling
    n_pairs, n_negatives = get_n_pairs(labels, rng)

    anchors = embeddings[n_pairs[:, 0]]          # (n, D)
    positives = embeddings[n_pairs[:, 1]]        # (n, D)
    negatives = embeddings[n_negatives]          # (n, n-1, D) -- reference only

    loss = angular_loss_pallas(anchors, positives)
    loss = jax.block_until_ready(loss)

    ref = jax.block_until_ready(
        angular_loss_reference(anchors, positives, negatives))
    tol = 1e-4 * max(1.0, abs(float(ref)))
    assert abs(float(loss) - float(ref)) < tol, (float(loss), float(ref))

    print("KERNEL_OK")
</pallas_src>

<mosaic_0001>
module attributes {stable_mosaic.version = 11 : i64} {
  func.func @kernel(%arg0: i32, %arg1: memref<128x128xf32, #tpu.memory_space<vmem>>, %arg2: memref<128x128xf32, #tpu.memory_space<vmem>>, %arg3: memref<128x128xf32, #tpu.memory_space<vmem>>, %arg4: memref<1x1x128xf32, #tpu.memory_space<vmem>>) attributes {dimension_semantics = [#tpu.dimension_semantics<parallel>], iteration_bounds = array<i64: 1>, scalar_prefetch = 0 : i64, scratch_operands = 0 : i64, tpu.core_type = #tpu.core_type<tc>, window_params = [{transform_indices = @transform_0, window_bounds = array<i64: 128, 128>}, {transform_indices = @transform_1, window_bounds = array<i64: 128, 128>}, {pipeline_mode = #tpu.pipeline_mode<synchronous>, transform_indices = @transform_2, window_bounds = array<i64: 128, 128>}, {transform_indices = @transform_3, window_bounds = array<i64: 1, 1, 128>}]} {
    %c128_i32 = arith.constant 128 : i32
    %0 = arith.muli %arg0, %c128_i32 : i32
    %c0 = arith.constant 0 : index
    %c0_0 = arith.constant 0 : index
    %1 = vector.load %arg1[%c0, %c0_0] : memref<128x128xf32, #tpu.memory_space<vmem>>, vector<128x128xf32>
    %c0_1 = arith.constant 0 : index
    %c0_2 = arith.constant 0 : index
    %2 = vector.load %arg2[%c0_1, %c0_2] : memref<128x128xf32, #tpu.memory_space<vmem>>, vector<128x128xf32>
    %c0_3 = arith.constant 0 : index
    %c0_4 = arith.constant 0 : index
    %3 = vector.load %arg3[%c0_3, %c0_4] : memref<128x128xf32, #tpu.memory_space<vmem>>, vector<128x128xf32>
    %4 = arith.addf %1, %2 : vector<128x128xf32>
    %cst = arith.constant dense<0.000000e+00> : vector<128x128xf32>
    %5 = tpu.matmul %4, %3, %cst {dimension_numbers = #tpu.dot_dimension_numbers<[1], [1], [0], [0], [0, 0, 1, 0], [], []>} : vector<128x128xf32>, vector<128x128xf32>, vector<128x128xf32> -> vector<128x128xf32>
    %6 = arith.mulf %1, %2 : vector<128x128xf32>
    %cst_5 = arith.constant dense<0.000000e+00> : vector<128xf32>
    %7 = vector.multi_reduction <add>, %6, %cst_5 [1] : vector<128x128xf32> to vector<128xf32>
    %8 = vector.shape_cast %7 : vector<128xf32> to vector<128x1xf32>
    %cst_6 = arith.constant 4.000000e+00 : f32
    %9 = vector.broadcast %cst_6 : f32 to vector<128x128xf32>
    %10 = arith.mulf %9, %5 : vector<128x128xf32>
    %cst_7 = arith.constant 4.000000e+00 : f32
    %11 = vector.broadcast %cst_7 : f32 to vector<128x1xf32>
    %12 = arith.mulf %11, %8 : vector<128x1xf32>
    %13 = vector.broadcast %12 : vector<128x1xf32> to vector<128x128xf32>
    %14 = arith.subf %10, %13 : vector<128x128xf32>
    %15 = tpu.iota {dimensions = array<i32: 1>} : vector<128x128xi32>
    %c4_i32 = arith.constant 4 : i32
    %16 = vector.broadcast %c4_i32 : i32 to vector<128x128xi32>
    %17 = arith.cmpi slt, %15, %16 : vector<128x128xi32>
    %18 = tpu.iota {dimensions = array<i32: 0>} : vector<128x1xi32>
    %19 = vector.broadcast %0 : i32 to vector<128x1xi32>
    %20 = arith.addi %19, %18 : vector<128x1xi32>
    %21 = vector.broadcast %20 : vector<128x1xi32> to vector<128x128xi32>
    %22 = arith.cmpi ne, %15, %21 : vector<128x128xi32>
    %23 = arith.andi %17, %22 : vector<128x128xi1>
    %cst_8 = arith.constant -1.000000e+30 : f32
    %24 = vector.broadcast %cst_8 : f32 to vector<128x128xf32>
    %25 = arith.select %23, %14, %24 : vector<128x128xi1>, vector<128x128xf32>
    %cst_9 = arith.constant dense<0xFF800000> : vector<128xf32>
    %26 = vector.multi_reduction <maximumf>, %25, %cst_9 [1] : vector<128x128xf32> to vector<128xf32>
    %27 = vector.shape_cast %26 : vector<128xf32> to vector<128x1xf32>
    %cst_10 = arith.constant 0.000000e+00 : f32
    %28 = vector.broadcast %cst_10 : f32 to vector<128x1xf32>
    %29 = arith.maximumf %27, %28 : vector<128x1xf32>
    %cst_11 = arith.constant 0.000000e+00 : f32
    %30 = vector.broadcast %cst_11 : f32 to vector<128x1xf32>
    %31 = arith.subf %30, %29 : vector<128x1xf32>
    %32 = math.exp %31 : vector<128x1xf32>
    %33 = vector.broadcast %29 : vector<128x1xf32> to vector<128x128xf32>
    %34 = arith.subf %25, %33 : vector<128x128xf32>
    %35 = math.exp %34 : vector<128x128xf32>
    %cst_12 = arith.constant dense<0.000000e+00> : vector<128xf32>
    %36 = vector.multi_reduction <add>, %35, %cst_12 [1] : vector<128x128xf32> to vector<128xf32>
    %37 = vector.shape_cast %36 : vector<128xf32> to vector<128x1xf32>
    %38 = arith.addf %32, %37 : vector<128x1xf32>
    %39 = math.log %38 : vector<128x1xf32>
    %c4_i32_13 = arith.constant 4 : i32
    %40 = vector.broadcast %c4_i32_13 : i32 to vector<128x1xi32>
    %41 = arith.cmpi slt, %20, %40 : vector<128x1xi32>
    %42 = arith.addf %29, %39 : vector<128x1xf32>
    %cst_14 = arith.constant 0.000000e+00 : f32
    %43 = vector.broadcast %cst_14 : f32 to vector<128x1xf32>
    %44 = arith.select %41, %42, %43 : vector<128x1xi1>, vector<128x1xf32>
    %45 = vector.shape_cast %44 : vector<128x1xf32> to vector<1x128x1xf32>
    %cst_15 = arith.constant dense<0.000000e+00> : vector<1xf32>
    %46 = vector.multi_reduction <add>, %45, %cst_15 [1, 2] : vector<1x128x1xf32> to vector<1xf32>
    %47 = vector.shape_cast %46 : vector<1xf32> to vector<1x1x1xf32>
    %48 = vector.extract %47[0, 0, 0] : f32 from vector<1x1x1xf32>
    %49 = arith.mulf %1, %1 : vector<128x128xf32>
    %50 = arith.mulf %2, %2 : vector<128x128xf32>
    %51 = arith.addf %49, %50 : vector<128x128xf32>
    %52 = vector.shape_cast %51 : vector<128x128xf32> to vector<1x128x128xf32>
    %cst_16 = arith.constant dense<0.000000e+00> : vector<1xf32>
    %53 = vector.multi_reduction <add>, %52, %cst_16 [1, 2] : vector<1x128x128xf32> to vector<1xf32>
    %54 = vector.shape_cast %53 : vector<1xf32> to vector<1x1x1xf32>
    %55 = vector.extract %54[0, 0, 0] : f32 from vector<1x1x1xf32>
    %56 = tpu.iota {dimensions = array<i32: 2>} : vector<1x1x128xi32>
    %c0_i32 = arith.constant 0 : i32
    %57 = vector.broadcast %c0_i32 : i32 to vector<1x1x128xi32>
    %58 = arith.cmpi eq, %56, %57 : vector<1x1x128xi32>
    %c1_i32 = arith.constant 1 : i32
    %59 = vector.broadcast %c1_i32 : i32 to vector<1x1x128xi32>
    %60 = arith.cmpi eq, %56, %59 : vector<1x1x128xi32>
    %cst_17 = arith.constant 0.000000e+00 : f32
    %61 = vector.broadcast %55 : f32 to vector<1x1x128xf32>
    %62 = vector.broadcast %cst_17 : f32 to vector<1x1x128xf32>
    %63 = arith.select %60, %61, %62 : vector<1x1x128xi1>, vector<1x1x128xf32>
    %64 = vector.broadcast %48 : f32 to vector<1x1x128xf32>
    %65 = arith.select %58, %64, %63 : vector<1x1x128xi1>, vector<1x1x128xf32>
    %c0_18 = arith.constant 0 : index
    %c0_19 = arith.constant 0 : index
    %c0_20 = arith.constant 0 : index
    %66 = vector.load %arg4[%c0_18, %c0_19, %c0_20] : memref<1x1x128xf32, #tpu.memory_space<vmem>>, vector<1x1x128xf32>
    tpu.vector_store %arg4[%c0_18, %c0_19, %c0_20], %65 {strides = array<i32>} : memref<1x1x128xf32, #tpu.memory_space<vmem>>, vector<1x1x128xf32>,
    return
  }
  func.func @transform_0(%arg0: i32) -> (i32, i32) {
    %c0_i32 = arith.constant 0 : i32
    %c0_i32_0 = arith.constant 0 : i32
    return %arg0, %c0_i32 : i32, i32
  }
  func.func @transform_1(%arg0: i32) -> (i32, i32) {
    %c0_i32 = arith.constant 0 : i32
    %c0_i32_0 = arith.constant 0 : i32
    return %arg0, %c0_i32 : i32, i32
  }
  func.func @transform_2(%arg0: i32) -> (i32, i32) {
    %c0_i32 = arith.constant 0 : i32
    %c0_i32_0 = arith.constant 0 : i32
    %c0_i32_1 = arith.constant 0 : i32
    return %c0_i32, %c0_i32_0 : i32, i32
  }
  func.func @transform_3(%arg0: i32) -> (i32, i32, i32) {
    %c0_i32 = arith.constant 0 : i32
    %c0_i32_0 = arith.constant 0 : i32
    %c0_i32_1 = arith.constant 0 : i32
    return %arg0, %c0_i32, %c0_i32_0 : i32, i32, i32
  }
}

module attributes {stable_mosaic.version = 11 : i64} {
  func.func @kernel(%arg0: i32, %arg1: memref<128x128xf32, #tpu.memory_space<vmem>>, %arg2: memref<128x128xf32, #tpu.memory_space<vmem>>, %arg3: memref<128x128xf32, #tpu.memory_space<vmem>>, %arg4: memref<1x1x128xf32, #tpu.memory_space<vmem>>) attributes {dimension_semantics = [#tpu.dimension_semantics<parallel>], iteration_bounds = array<i64: 1>, scalar_prefetch = 0 : i64, scratch_operands = 0 : i64, tpu.core_type = #tpu.core_type<tc>, window_params = [{transform_indices = @transform_0, window_bounds = array<i64: 128, 128>}, {transform_indices = @transform_1, window_bounds = array<i64: 128, 128>}, {pipeline_mode = #tpu.pipeline_mode<synchronous>, transform_indices = @transform_2, window_bounds = array<i64: 128, 128>}, {transform_indices = @transform_3, window_bounds = array<i64: 1, 1, 128>}]} {
    %c128_i32 = arith.constant 128 : i32
    %0 = arith.muli %arg0, %c128_i32 : i32
    %c0 = arith.constant 0 : index
    %c0_0 = arith.constant 0 : index
    %1 = vector.load %arg1[%c0, %c0_0] : memref<128x128xf32, #tpu.memory_space<vmem>>, vector<128x128xf32>
    %c0_1 = arith.constant 0 : index
    %c0_2 = arith.constant 0 : index
    %2 = vector.load %arg2[%c0_1, %c0_2] : memref<128x128xf32, #tpu.memory_space<vmem>>, vector<128x128xf32>
    %c0_3 = arith.constant 0 : index
    %c0_4 = arith.constant 0 : index
    %3 = vector.load %arg3[%c0_3, %c0_4] : memref<128x128xf32, #tpu.memory_space<vmem>>, vector<128x128xf32>
    %4 = arith.addf %1, %2 : vector<128x128xf32>
    %cst = arith.constant dense<0.000000e+00> : vector<128x128xf32>
    %5 = tpu.matmul %4, %3, %cst {dimension_numbers = #tpu.dot_dimension_numbers<[1], [1], [0], [0], [0, 0, 1, 0], [], []>} : vector<128x128xf32>, vector<128x128xf32>, vector<128x128xf32> -> vector<128x128xf32>
    %6 = arith.mulf %1, %2 : vector<128x128xf32>
    %cst_5 = arith.constant dense<0.000000e+00> : vector<128xf32>
    %7 = vector.multi_reduction <add>, %6, %cst_5 [1] : vector<128x128xf32> to vector<128xf32>
    %8 = vector.shape_cast %7 : vector<128xf32> to vector<128x1xf32>
    %cst_6 = arith.constant 4.000000e+00 : f32
    %9 = vector.broadcast %cst_6 : f32 to vector<128x128xf32>
    %10 = arith.mulf %9, %5 : vector<128x128xf32>
    %cst_7 = arith.constant 4.000000e+00 : f32
    %11 = vector.broadcast %cst_7 : f32 to vector<128x1xf32>
    %12 = arith.mulf %11, %8 : vector<128x1xf32>
    %13 = vector.broadcast %12 : vector<128x1xf32> to vector<128x128xf32>
    %14 = arith.subf %10, %13 : vector<128x128xf32>
    %15 = tpu.iota {dimensions = array<i32: 1>} : vector<128x128xi32>
    %c4_i32 = arith.constant 4 : i32
    %16 = vector.broadcast %c4_i32 : i32 to vector<128x128xi32>
    %17 = arith.cmpi slt, %15, %16 : vector<128x128xi32>
    %18 = tpu.iota {dimensions = array<i32: 0>} : vector<128x1xi32>
    %19 = vector.broadcast %0 : i32 to vector<128x1xi32>
    %20 = arith.addi %19, %18 : vector<128x1xi32>
    %21 = vector.broadcast %20 : vector<128x1xi32> to vector<128x128xi32>
    %22 = arith.cmpi ne, %15, %21 : vector<128x128xi32>
    %23 = arith.andi %17, %22 : vector<128x128xi1>
    %cst_8 = arith.constant -1.000000e+30 : f32
    %24 = vector.broadcast %cst_8 : f32 to vector<128x128xf32>
    %25 = arith.select %23, %14, %24 : vector<128x128xi1>, vector<128x128xf32>
    %cst_9 = arith.constant dense<0xFF800000> : vector<128xf32>
    %26 = vector.multi_reduction <maximumf>, %25, %cst_9 [1] : vector<128x128xf32> to vector<128xf32>
    %27 = vector.shape_cast %26 : vector<128xf32> to vector<128x1xf32>
    %cst_10 = arith.constant 0.000000e+00 : f32
    %28 = vector.broadcast %cst_10 : f32 to vector<128x1xf32>
    %29 = arith.maximumf %27, %28 : vector<128x1xf32>
    %cst_11 = arith.constant 0.000000e+00 : f32
    %30 = vector.broadcast %cst_11 : f32 to vector<128x1xf32>
    %31 = arith.subf %30, %29 : vector<128x1xf32>
    %32 = math.exp %31 : vector<128x1xf32>
    %33 = vector.broadcast %29 : vector<128x1xf32> to vector<128x128xf32>
    %34 = arith.subf %25, %33 : vector<128x128xf32>
    %35 = math.exp %34 : vector<128x128xf32>
    %cst_12 = arith.constant dense<0.000000e+00> : vector<128xf32>
    %36 = vector.multi_reduction <add>, %35, %cst_12 [1] : vector<128x128xf32> to vector<128xf32>
    %37 = vector.shape_cast %36 : vector<128xf32> to vector<128x1xf32>
    %38 = arith.addf %32, %37 : vector<128x1xf32>
    %39 = math.log %38 : vector<128x1xf32>
    %c4_i32_13 = arith.constant 4 : i32
    %40 = vector.broadcast %c4_i32_13 : i32 to vector<128x1xi32>
    %41 = arith.cmpi slt, %20, %40 : vector<128x1xi32>
    %42 = arith.addf %29, %39 : vector<128x1xf32>
    %cst_14 = arith.constant 0.000000e+00 : f32
    %43 = vector.broadcast %cst_14 : f32 to vector<128x1xf32>
    %44 = arith.select %41, %42, %43 : vector<128x1xi1>, vector<128x1xf32>
    %45 = vector.shape_cast %44 : vector<128x1xf32> to vector<1x128x1xf32>
    %cst_15 = arith.constant dense<0.000000e+00> : vector<1xf32>
    %46 = vector.multi_reduction <add>, %45, %cst_15 [1, 2] : vector<1x128x1xf32> to vector<1xf32>
    %47 = vector.shape_cast %46 : vector<1xf32> to vector<1x1x1xf32>
    %48 = vector.extract %47[0, 0, 0] : f32 from vector<1x1x1xf32>
    %49 = arith.mulf %1, %1 : vector<128x128xf32>
    %50 = arith.mulf %2, %2 : vector<128x128xf32>
    %51 = arith.addf %49, %50 : vector<128x128xf32>
    %52 = vector.shape_cast %51 : vector<128x128xf32> to vector<1x128x128xf32>
    %cst_16 = arith.constant dense<0.000000e+00> : vector<1xf32>
    %53 = vector.multi_reduction <add>, %52, %cst_16 [1, 2] : vector<1x128x128xf32> to vector<1xf32>
    %54 = vector.shape_cast %53 : vector<1xf32> to vector<1x1x1xf32>
    %55 = vector.extract %54[0, 0, 0] : f32 from vector<1x1x1xf32>
    %56 = tpu.iota {dimensions = array<i32: 2>} : vector<1x1x128xi32>
    %c0_i32 = arith.constant 0 : i32
    %57 = vector.broadcast %c0_i32 : i32 to vector<1x1x128xi32>
    %58 = arith.cmpi eq, %56, %57 : vector<1x1x128xi32>
    %c1_i32 = arith.constant 1 : i32
    %59 = vector.broadcast %c1_i32 : i32 to vector<1x1x128xi32>
    %60 = arith.cmpi eq, %56, %59 : vector<1x1x128xi32>
    %cst_17 = arith.constant 0.000000e+00 : f32
    %61 = vector.broadcast %55 : f32 to vector<1x1x128xf32>
    %62 = vector.broadcast %cst_17 : f32 to vector<1x1x128xf32>
    %63 = arith.select %60, %61, %62 : vector<1x1x128xi1>, vector<1x1x128xf32>
    %64 = vector.broadcast %48 : f32 to vector<1x1x128xf32>
    %65 = arith.select %58, %64, %63 : vector<1x1x128xi1>, vector<1x1x128xf32>
    %c0_18 = arith.constant 0 : index
    %c0_19 = arith.constant 0 : index
    %c0_20 = arith.constant 0 : index
    %66 = vector.load %arg4[%c0_18, %c0_19, %c0_20] : memref<1x1x128xf32, #tpu.memory_space<vmem>>, vector<1x1x128xf32>
    tpu.vector_store %arg4[%c0_18, %c0_19, %c0_20], %65 {strides = array<i32>} : memref<1x1x128xf32, #tpu.memory_space<vmem>>, vector<1x1x128xf32>,
    return
  }
  func.func @transform_0(%arg0: i32) -> (i32, i32) {
    %c0_i32 = arith.constant 0 : i32
    %c0_i32_0 = arith.constant 0 : i32
    return %arg0, %c0_i32 : i32, i32
  }
  func.func @transform_1(%arg0: i32) -> (i32, i32) {
    %c0_i32 = arith.constant 0 : i32
    %c0_i32_0 = arith.constant 0 : i32
    return %arg0, %c0_i32 : i32, i32
  }
  func.func @transform_2(%arg0: i32) -> (i32, i32) {
    %c0_i32 = arith.constant 0 : i32
    %c0_i32_0 = arith.constant 0 : i32
    %c0_i32_1 = arith.constant 0 : i32
    return %c0_i32, %c0_i32_0 : i32, i32
  }
  func.func @transform_3(%arg0: i32) -> (i32, i32, i32) {
    %c0_i32 = arith.constant 0 : i32
    %c0_i32_0 = arith.constant 0 : i32
    %c0_i32_1 = arith.constant 0 : i32
    return %arg0, %c0_i32, %c0_i32_0 : i32, i32, i32
  }
}

</mosaic_0001>

<bundles_post_ra>
// kernel: tpu_custom_call.1
= control target key start
LH: loop header
LB: loop body
LE: loop exit
PB: predicated region body
PF: predicated region fallthrough
CT: control target
= control target key end

     0   :  { %8 = vsyncpa [#allocation3], 0  ;;  %s1203_s0 = inlined_call_operand.hbm [shape: f32[128,128], index: 0, kind: input, shape index: {}]   ;;  %s1204_s1 = inlined_call_operand.hbm [shape: f32[128,128], index: 1, kind: input, shape index: {}]   ;;  %s1205_s2 = inlined_call_operand.hbm [shape: f32[128,128], index: 2, kind: input, shape index: {}]   ;;  %s1206_s3 = inlined_call_operand.hbm [shape: f32[1,1,128], index: 3, kind: output, shape index: {}]  }
   0x1   :  { %9 = vsyncpa [#allocation6], 0 }
   0x2   :  { %10 = vsyncpa [#allocation4], 0  ;;  %s1077_s12 = smov [#allocation5]   ;;  %s1078_s14 = smov [#allocation2]  }
   0x3   :  { %s28_s13 = sshll.u32 %s1077_s12, 4  ;;  %s16_s15 = sshll.u32 %s1078_s14, 4  ;;  %s29_s13 = int_to_ptr.vmem [resolvable:$true] %s28_s13  ;;  %s17_s15 = int_to_ptr.vmem [resolvable:$true] %s16_s15 }
   0x4   :  { %s999_s16 = scalar_lea.vmem %s29_s13, 2048  ;;  %p1004_p1 = scmp.lt.s32.totalorder %s29_s13, %s29_s13 }
   0x5   :  { %p1000_p0 = scmp.ne.s32.totalorder %s29_s13, %s999_s16  ;;  %p1005_p2 = scmp.lt.s32.totalorder %s999_s16, %s999_s16 }
   0x7   :  { %p1006_p3 = por %p1005_p2, %p1004_p1 }
   0x9   :  { %p1007_p4 = pnand %p1006_p3, %p1000_p0 }
   0xb   :  { %1010 = shalt.err (!%p1007_p4)
}
   0xc   :  { %s1079_s17 = smov 128   ;;  %s1080_s18 = smov 8  }
   0xd   :  { %34 = dma.hbm_to_vmem [thread:$0]  %s1204_s1, 2048, %s29_s13, [#allocation6], %s1079_s17, %s1079_s17, %s1080_s18  }
   0xe   :  { %s1019_s21 = scalar_lea.vmem %s17_s15, 2048  ;;  %p1024_p6 = scmp.lt.s32.totalorder %s17_s15, %s17_s15 }
   0xf   :  { %p1020_p5 = scmp.ne.s32.totalorder %s17_s15, %s1019_s21  ;;  %p1025_p7 = scmp.lt.s32.totalorder %s1019_s21, %s1019_s21 }
  0x11   :  { %p1026_p8 = por %p1025_p7, %p1024_p6 }
  0x13   :  { %p1027_p9 = pnand %p1026_p8, %p1020_p5 }
  0x15   :  { %1030 = shalt.err (!%p1027_p9)
}
  0x16   :  { %22 = dma.hbm_to_vmem [thread:$0]  %s1203_s0, 2048, %s17_s15, [#allocation3], %s1079_s17, %s1079_s17, %s1080_s18  }
  0x17   :  { %s1081_s24 = smov [#allocation7]  }
  0x18   :  { %s40_s25 = sshll.u32 %s1081_s24, 4  ;;  %s41_s25 = int_to_ptr.vmem [resolvable:$true] %s40_s25 }
  0x19   :  { %s1039_s26 = scalar_lea.vmem %s41_s25, 2048  ;;  %p1044_p11 = scmp.lt.s32.totalorder %s41_s25, %s41_s25 }
  0x1a   :  { %p1040_p10 = scmp.ne.s32.totalorder %s41_s25, %s1039_s26  ;;  %p1045_p12 = scmp.lt.s32.totalorder %s1039_s26, %s1039_s26 }
  0x1c   :  { %p1046_p13 = por %p1045_p12, %p1044_p11 }
  0x1e   :  { %p1047_p0 = pnand %p1046_p13, %p1040_p10 }
  0x20   :  { %1050 = shalt.err (!%p1047_p0)
}
  0x21   :  { %46 = dma.hbm_to_vmem [thread:$0]  %s1205_s2, 2048, %s41_s25, [#allocation6], %s1079_s17, %s1079_s17, %s1080_s18  }
  0x22   :  { %1071 = dma.done.wait [#allocation3], 2048  }
  0x23   :  { %1072 = vsyncadd [#allocation3], 4294965248 }
  0x24   :  { %1073 = dma.done.wait [#allocation6], 4096  }
  0x25   :  { %1074 = vsyncadd [#allocation6], 4294963200  ;;  %v104_v0 = vld [vmem:[#allocation7 + $0x78] sm:$0xff]  ;;  %v103_v1 = vld [vmem:[#allocation7 + $0x70] sm:$0xff]  ;;  %v362_v30 = vlaneseq  ;;  %vm719_vm4 = vcmask 7168   ;;  %s1082_s2 = smov [#allocation8]  }
  0x26   :  { %887 = vmatprep.subr.mxu0 %v104_v0  ;;  %943 = vmatprep.subr.mxu1 %v104_v0  ;;  %v102_v2 = vld [vmem:[#allocation7 + $0x68] sm:$0xff]  ;;  %v57_v3 = vld [vmem:[#allocation2] sm:$0xff]  ;;  %v100_v16 = vld [vmem:[#allocation7 + $0x58] sm:$0xff]  ;;  %s845_s28 = sshll.u32 %s1082_s2, 4  ;;  %s846_s28 = int_to_ptr.vmem [resolvable:$true] %s845_s28 }
  0x27   :  { %888 = vmatpush3.xpose.msra.mxu0 %v104_v0  ;;  %959 = vmatpush3.xpose.msra.mxu1 %v104_v0  ;;  %v73_v4 = vld [vmem:[#allocation5] sm:$0xff]  ;;  %v760_v6 = vmul.f32 %v57_v3, %v57_v3  ;;  %v1112_v8 = vld [vmem:[#allocation2 + $0x8] sm:$0xff]  ;;  %v99_v18 = vld [vmem:[#allocation7 + $0x50] sm:$0xff]  ;;  %v1124_v31 = vand.u32 127, %v362_v30  ;;  %v1126_v32 = vshrl.u32 %v362_v30, 7  ;;  %s1051_s30 = scalar_lea.vmem %s846_s28, 16  ;;  %p1056_p2 = scmp.lt.s32.totalorder %s846_s28, %s846_s28 }
  0x28   :  { %889 = vmatprep.subr.mxu0 %v103_v1  ;;  %944 = vmatprep.subr.mxu1 %v103_v1  ;;  %v105_v5 = vadd.f32 %v73_v4, %v57_v3  ;;  %v776_v7 = vmul.f32 %v73_v4, %v73_v4  ;;  %v266_v9 = vmul.f32 %v73_v4, %v57_v3  ;;  %v101_v11 = vld [vmem:[#allocation7 + $0x60] sm:$0xff]  ;;  %v1116_v13 = vld [vmem:[#allocation5 + $0x8] sm:$0xff]  ;;  %v96_v21 = vld [vmem:[#allocation7 + $0x38] sm:$0xff]  ;;  %p1052_p1 = scmp.ne.s32.totalorder %s846_s28, %s1051_s30  ;;  %s1055_s4 = scalar_lea.vmem %s846_s28, 32 }
  0x29   :  { %v761_v10 = vmul.f32 %v1112_v8, %v1112_v8  ;;  %v777_v14 = vmul.f32 %v1116_v13, %v1116_v13  ;;  %v98_v19 = vld [vmem:[#allocation7 + $0x48] sm:$0xff]  ;;  %v97_v20 = vld [vmem:[#allocation7 + $0x40] sm:$0xff]  ;;  %v95_v22 = vld [vmem:[#allocation7 + $0x30] sm:$0xff]  ;;  %v106_v29 = vadd.f32 %v1116_v13, %v1112_v8  ;;  %vm364_vm0 = vcmp.lt.s32.totalorder %v1124_v31, 4  ;;  %p1057_p3 = scmp.lt.s32.totalorder %s1055_s4, %s1051_s30 }
  0x2a   :  { %919 = vmatprep.mubr.f32.mxu0 %v105_v5  ;;  %v792_v12 = vadd.f32 %v776_v7, %v760_v6  ;;  %282 = vadd.xlane.f32.xlu0 %v266_v9  ;;  %v94_v23 = vld [vmem:[#allocation7 + $0x28] sm:$0xff]  ;;  %v93_v24 = vld [vmem:[#allocation7 + $0x20] sm:$0xff]  ;;  %v92_v25 = vld [vmem:[#allocation7 + $0x18] sm:$0xff]  ;;  %vm399_vm1 = vcmp.ne.s32.totalorder %v1124_v31, %v1126_v32  ;;  %vm671_vm3 = vcmp.lt.s32.totalorder %v1126_v32, 4  ;;  %vm833_vm5 = vcmp.eq.s32.totalorder %v1124_v31, 1 }
  0x2b   :  { %890 = vmatpush3.xpose.msra.mxu0 %v103_v1  ;;  %960 = vmatpush3.xpose.msra.mxu1 %v103_v1  ;;  %v793_v15 = vadd.f32 %v777_v14, %v761_v10  ;;  %v91_v26 = vld [vmem:[#allocation7 + $0x10] sm:$0xff]  ;;  %v90_v27 = vld [vmem:[#allocation7 + $0x8] sm:$0xff]  ;;  %v89_v28 = vld [vmem:[#allocation7] sm:$0xff]  ;;  %vm832_vm6 = vcmp.eq.s32.totalorder %v1124_v31, 0  ;;  %p1058_p4 = por %p1057_p3, %p1056_p2 }
  0x2c   :  { %891 = vmatprep.subr.mxu0 %v102_v2  ;;  %945 = vmatprep.subr.mxu1 %v102_v2  ;;  %vm415_vm2 = vmand %vm364_vm0, %vm399_vm1  ;;  %v1131_v41 = vld [vmem:[#allocation2 + $0x10] sm:$0xff]  ;;  %v1142_v47 = vld [vmem:[#allocation2 + $0x18] sm:$0xff] }
  0x2d   :  { %v1120_v17 = vadd.f32 %v793_v15, %v792_v12  ;;  %v1133_v42 = vld [vmem:[#allocation5 + $0x10] sm:$0xff]  ;;  %v762_v45 = vmul.f32 %v1131_v41, %v1131_v41  ;;  %v1144_v48 = vld [vmem:[#allocation5 + $0x18] sm:$0xff]  ;;  %v763_v50 = vmul.f32 %v1142_v47, %v1142_v47  ;;  %v1150_v53 = vld [vmem:[#allocation2 + $0x20] sm:$0xff]  ;;  %p1059_p5 = pnand %p1058_p4, %p1052_p1 }
  0x2e   :  { %v778_v46 = vmul.f32 %v1133_v42, %v1133_v42  ;;  %v779_v51 = vmul.f32 %v1144_v48, %v1144_v48  ;;  %v1152_v54 = vld [vmem:[#allocation5 + $0x20] sm:$0xff]  ;;  %v764_v55 = vmul.f32 %v1150_v53, %v1150_v53  ;;  %v1159_v59 = vld [vmem:[#allocation2 + $0x28] sm:$0xff]  ;;  %v1167_v4 = vld [vmem:[#allocation2 + $0x30] sm:$0xff] }
  0x2f   :  { %892 = vmatpush3.xpose.msra.mxu0 %v102_v2  ;;  %961 = vmatpush3.xpose.msra.mxu1 %v102_v2  ;;  %v780_v56 = vmul.f32 %v1152_v54, %v1152_v54  ;;  %v1161_v60 = vld [vmem:[#allocation5 + $0x28] sm:$0xff]  ;;  %v765_v61 = vmul.f32 %v1159_v59, %v1159_v59  ;;  %v1169_v5 = vld [vmem:[#allocation5 + $0x30] sm:$0xff]  ;;  %v766_v7 = vmul.f32 %v1167_v4, %v1167_v4  ;;  %v1175_v9 = vld [vmem:[#allocation2 + $0x38] sm:$0xff] }
  0x30   :  { %893 = vmatprep.subr.mxu0 %v101_v11  ;;  %946 = vmatprep.subr.mxu1 %v101_v11  ;;  %v794_v52 = vadd.f32 %v778_v46, %v762_v45  ;;  %v795_v57 = vadd.f32 %v779_v51, %v763_v50  ;;  %v781_v62 = vmul.f32 %v1161_v60, %v1161_v60  ;;  %v1177_v10 = vld [vmem:[#allocation5 + $0x38] sm:$0xff]  ;;  %v65_v14 = vld [vmem:[#allocation2 + $0x40] sm:$0xff]  ;;  %v70_v51 = vld [vmem:[#allocation2 + $0x68] sm:$0xff] }
  0x31   :  { %v796_v63 = vadd.f32 %v780_v56, %v764_v55  ;;  %v782_v8 = vmul.f32 %v1169_v5, %v1169_v5  ;;  %v783_v12 = vmul.f32 %v1177_v10, %v1177_v10  ;;  %v81_v15 = vld [vmem:[#allocation5 + $0x40] sm:$0xff]  ;;  %v773_v55 = vmul.f32 %v70_v51, %v70_v51 }
  0x32   :  { %v809_v58 = vadd.f32 %v1120_v17, %v794_v52  ;;  %v797_v1 = vadd.f32 %v781_v62, %v765_v61  ;;  %v784_v17 = vmul.f32 %v81_v15, %v81_v15  ;;  %v86_v52 = vld [vmem:[#allocation5 + $0x68] sm:$0xff]  ;;  %v71_v61 = vld [vmem:[#allocation2 + $0x70] sm:$0xff] }
  0x33   :  { %894 = vmatpush3.xpose.msra.mxu0 %v101_v11  ;;  %962 = vmatpush3.xpose.msra.mxu1 %v101_v11  ;;  %v767_v11 = vmul.f32 %v1175_v9, %v1175_v9  ;;  %v798_v13 = vadd.f32 %v782_v8, %v766_v7  ;;  %v789_v56 = vmul.f32 %v86_v52, %v86_v52  ;;  %v87_v62 = vld [vmem:[#allocation5 + $0x70] sm:$0xff] }
  0x34   :  { %895 = vmatprep.subr.mxu0 %v100_v16  ;;  %947 = vmatprep.subr.mxu1 %v100_v16  ;;  %v810_v0 = vadd.f32 %v809_v58, %v795_v57 }
  0x36   :  { %v811_v2 = vadd.f32 %v810_v0, %v796_v63  ;;  %v774_v63 = vmul.f32 %v71_v61, %v71_v61  ;;  %v790_v0 = vmul.f32 %v87_v62, %v87_v62 }
  0x37   :  { %896 = vmatpush3.xpose.msra.mxu0 %v100_v16  ;;  %963 = vmatpush3.xpose.msra.mxu1 %v100_v16  ;;  %v768_v16 = vmul.f32 %v65_v14, %v65_v14 }
  0x38   :  { %897 = vmatprep.subr.mxu0 %v99_v18  ;;  %948 = vmatprep.subr.mxu1 %v99_v18  ;;  %v812_v6 = vadd.f32 %v811_v2, %v797_v1  ;;  %v805_v1 = vadd.f32 %v789_v56, %v773_v55 }
  0x3b   :  { %898 = vmatpush3.xpose.msra.mxu0 %v99_v18  ;;  %964 = vmatpush3.xpose.msra.mxu1 %v99_v18  ;;  %v799_v18 = vadd.f32 %v783_v12, %v767_v11  ;;  %v806_v11 = vadd.f32 %v790_v0, %v774_v63 }
  0x3c   :  { %899 = vmatprep.subr.mxu0 %v98_v19  ;;  %949 = vmatprep.subr.mxu1 %v98_v19 }
  0x3f   :  { %900 = vmatpush3.xpose.msra.mxu0 %v98_v19  ;;  %965 = vmatpush3.xpose.msra.mxu1 %v98_v19  ;;  %v813_v19 = vadd.f32 %v812_v6, %v798_v13  ;;  %v88_v6 = vld [vmem:[#allocation5 + $0x78] sm:$0xff] }
  0x40   :  { %901 = vmatprep.subr.mxu0 %v97_v20  ;;  %950 = vmatprep.subr.mxu1 %v97_v20  ;;  %v791_v8 = vmul.f32 %v88_v6, %v88_v6 }
  0x43   :  { %902 = vmatpush3.xpose.msra.mxu0 %v97_v20  ;;  %966 = vmatpush3.xpose.msra.mxu1 %v97_v20  ;;  %v66_v20 = vld [vmem:[#allocation2 + $0x48] sm:$0xff] }
  0x44   :  { %903 = vmatprep.subr.mxu0 %v96_v21  ;;  %951 = vmatprep.subr.mxu1 %v96_v21 }
  0x47   :  { %904 = vmatpush3.xpose.msra.mxu0 %v96_v21  ;;  %967 = vmatpush3.xpose.msra.mxu1 %v96_v21  ;;  %v82_v21 = vld [vmem:[#allocation5 + $0x48] sm:$0xff] }
  0x48   :  { %905 = vmatprep.subr.mxu0 %v95_v22  ;;  %952 = vmatprep.subr.mxu1 %v95_v22 }
  0x4b   :  { %906 = vmatpush3.xpose.msra.mxu0 %v95_v22  ;;  %968 = vmatpush3.xpose.msra.mxu1 %v95_v22  ;;  %v769_v22 = vmul.f32 %v66_v20, %v66_v20 }
  0x4c   :  { %907 = vmatprep.subr.mxu0 %v94_v23  ;;  %953 = vmatprep.subr.mxu1 %v94_v23 }
  0x4f   :  { %908 = vmatpush3.xpose.msra.mxu0 %v94_v23  ;;  %969 = vmatpush3.xpose.msra.mxu1 %v94_v23  ;;  %v785_v23 = vmul.f32 %v82_v21, %v82_v21 }
  0x50   :  { %909 = vmatprep.subr.mxu0 %v93_v24  ;;  %954 = vmatprep.subr.mxu1 %v93_v24 }
  0x51   :  { %v801_v30 = vadd.f32 %v785_v23, %v769_v22  ;;  %v107_v22 = vadd.f32 %v1133_v42, %v1131_v41  ;;  %v111_v41 = vadd.f32 %v1169_v5, %v1167_v4  ;;  %v119_v42 = vadd.f32 %v87_v62, %v71_v61 }
  0x53   :  { %910 = vmatpush3.xpose.msra.mxu0 %v93_v24  ;;  %970 = vmatpush3.xpose.msra.mxu1 %v93_v24  ;;  %v800_v24 = vadd.f32 %v784_v17, %v768_v16 }
  0x54   :  { %911 = vmatprep.subr.mxu0 %v92_v25  ;;  %955 = vmatprep.subr.mxu1 %v92_v25 }
  0x57   :  { %912 = vmatpush3.xpose.msra.mxu0 %v92_v25  ;;  %971 = vmatpush3.xpose.msra.mxu1 %v92_v25  ;;  %v814_v25 = vadd.f32 %v813_v19, %v799_v18  ;;  %v113_v18 = vadd.f32 %v81_v15, %v65_v14  ;;  %v114_v19 = vadd.f32 %v82_v21, %v66_v20 }
  0x58   :  { %913 = vmatprep.subr.mxu0 %v91_v26  ;;  %956 = vmatprep.subr.mxu1 %v91_v26  ;;  %v110_v15 = vadd.f32 %v1161_v60, %v1159_v59  ;;  %v118_v20 = vadd.f32 %v86_v52, %v70_v51 }
  0x59   :  { %931 = vmatprep.mubr.f32.mxu1 %v113_v18 }
  0x5b   :  { %914 = vmatpush3.xpose.msra.mxu0 %v91_v26  ;;  %972 = vmatpush3.xpose.msra.mxu1 %v91_v26  ;;  %v67_v26 = vld [vmem:[#allocation2 + $0x50] sm:$0xff] }
  0x5c   :  { %915 = vmatprep.subr.mxu0 %v90_v27  ;;  %957 = vmatprep.subr.mxu1 %v90_v27 }
  0x5f   :  { %916 = vmatpush3.xpose.msra.mxu0 %v90_v27  ;;  %973 = vmatpush3.xpose.msra.mxu1 %v90_v27  ;;  %v83_v27 = vld [vmem:[#allocation5 + $0x50] sm:$0xff] }
  0x60   :  { %917 = vmatprep.subr.mxu0 %v89_v28  ;;  %958 = vmatprep.subr.mxu1 %v89_v28  ;;  %v115_v23 = vadd.f32 %v83_v27, %v67_v26 }
  0x63   :  { %918 = vmatpush3.xpose.msra.mxu0 %v89_v28  ;;  %974 = vmatpush3.xpose.msra.mxu1 %v89_v28  ;;  %v770_v28 = vmul.f32 %v67_v26, %v67_v26 }
  0x66   :  { %920 = vmatmul.mubr.f32.vlgmr.msra.gmra.mxu0 %v106_v29  ;;  %v786_v29 = vmul.f32 %v83_v27, %v83_v27  ;;  %932 = vmatmul.mubr.f32.vlgmr.msra.gmra.mxu1 %v114_v19 }
  0x67   :  { %922 = vmatprep.mubr.f32.mxu0 %v107_v22  ;;  %934 = vmatprep.mubr.f32.mxu1 %v115_v23 }
  0xb3   :  { %v283_v33 = vpop.xlane.xlu0 %282 }
  0xb4   :  { %v330_v35 = vmul.f32 4.0, %v283_v33  ;;  %v815_v33 = vadd.f32 %v814_v25, %v800_v24  ;;  %v108_v24 = vadd.f32 %v1144_v48, %v1142_v47  ;;  %v112_v47 = vadd.f32 %v1177_v10, %v1175_v9 }
  0xb6   :  { %923 = vmatmul.mubr.f32.gmra.mxu0 %v108_v24 }
 0x126   :  { %v921_v34 = vpop.f32.mrf.mxu0  ;;  %v933_v27 = vpop.f32.mrf.mxu1 }
 0x127   :  { %v68_v34 = vld [vmem:[#allocation2 + $0x58] sm:$0xff] }
 0x128   :  { %v187_v36 = vpop.f32.mrf.mxu0 }
 0x129   :  { %v314_v37 = vmul.f32 4.0, %v187_v36  ;;  %v771_v36 = vmul.f32 %v68_v34, %v68_v34 }
 0x12b   :  { %v346_v38 = vsub.f32 %v314_v37, %v330_v35  ;;  %v84_v35 = vld [vmem:[#allocation5 + $0x58] sm:$0xff] }
 0x12c   :  { %v787_v37 = vmul.f32 %v84_v35, %v84_v35  ;;  %v116_v25 = vadd.f32 %v84_v35, %v68_v34 }
 0x12d   :  { %v431_v39 = vsel %vm415_vm2, %v346_v38, -1e+30  ;;  %v802_v38 = vadd.f32 %v786_v29, %v770_v28  ;;  %v109_v28 = vadd.f32 %v1152_v54, %v1150_v53 }
 0x12e   :  { %447 = vmax.xlane.f32.xlu0 %v431_v39  ;;  %935 = vmatmul.mubr.f32.gmra.mxu1 %v116_v25 }
 0x12f   :  { %925 = vmatprep.mubr.f32.mxu0 %v109_v28 }
 0x130   :  { %926 = vmatmul.mubr.f32.gmra.mxu0 %v110_v15 }
 0x131   :  { %928 = vmatprep.mubr.f32.mxu0 %v111_v41 }
 0x134   :  { %929 = vmatmul.mubr.f32.gmra.mxu0 %v112_v47 }
 0x176   :  { %v924_v29 = vpop.f32.mrf.mxu0 }
 0x1b7   :  { %v448_v40 = vpop.xlane.xlu0 %447 }
 0x1b8   :  { %v1135_v43 = vmax.f32 %v448_v40, 0.0  ;;  %v69_v40 = vld [vmem:[#allocation2 + $0x60] sm:$0xff] }
 0x1b9   :  { %v772_v45 = vmul.f32 %v69_v40, %v69_v40 }
 0x1ba   :  { %v543_v44 = vsub.f32 %v431_v39, %v1135_v43  ;;  %v816_v39 = vadd.f32 %v815_v33, %v801_v30  ;;  %v495_v53 = vsub.f32 0.0, %v1135_v43  ;;  %v227_v30 = vpop.f32.mrf.mxu1  ;;  %v197_v33 = vpop.f32.mrf.mxu0 }
 0x1bc   :  { %v559_v49 = vmul.f32 1.442695, %v543_v44  ;;  %v85_v44 = vld [vmem:[#allocation5 + $0x60] sm:$0xff]  ;;  %v817_v50 = vadd.f32 %v816_v39, %v802_v38  ;;  %v511_v54 = vmul.f32 1.442695, %v495_v53 }
 0x1bd   :  { %v788_v46 = vmul.f32 %v85_v44, %v85_v44  ;;  %v117_v14 = vadd.f32 %v85_v44, %v69_v40 }
 0x1be   :  { %985 = vpow2.f32 %v559_v49  ;;  %v803_v49 = vadd.f32 %v787_v37, %v771_v36 }
 0x1bf   :  { %v804_v57 = vadd.f32 %v788_v46, %v772_v45  ;;  %937 = vmatprep.mubr.f32.mxu1 %v117_v14  ;;  %987 = vpow2.f32 %v511_v54 }
 0x1c0   :  { %v818_v58 = vadd.f32 %v817_v50, %v803_v49  ;;  %938 = vmatmul.mubr.f32.gmra.mxu1 %v118_v20 }
 0x1c1   :  { %940 = vmatprep.mubr.f32.mxu1 %v119_v42 }
 0x1c2   :  { %v819_v2 = vadd.f32 %v818_v58, %v804_v57 }
 0x1c4   :  { %v820_v12 = vadd.f32 %v819_v2, %v805_v1 }
 0x1c6   :  { %v821_v16 = vadd.f32 %v820_v12, %v806_v11 }
 0x1cb   :  { %v986_v3 = vpop.eup %985 }
 0x1cc   :  { %591 = vadd.xlane.f32.xlu1 %v986_v3  ;;  %v72_v3 = vld [vmem:[#allocation2 + $0x78] sm:$0xff]  ;;  %v988_v59 = vpop.eup %987 }
 0x1cd   :  { %v775_v7 = vmul.f32 %v72_v3, %v72_v3  ;;  %v120_v48 = vadd.f32 %v88_v6, %v72_v3 }
 0x1cf   :  { %v807_v13 = vadd.f32 %v791_v8, %v775_v7  ;;  %941 = vmatmul.mubr.f32.gmra.mxu1 %v120_v48 }
 0x1d1   :  { %v822_v17 = vadd.f32 %v821_v16, %v807_v13 }
 0x1d3   :  { %823 = vadd.xlane.f32.xlu0 %v822_v17 }
 0x1ee   :  { %v936_v34 = vpop.f32.mrf.mxu1 }
 0x1f0   :  { %v237_v35 = vpop.f32.mrf.mxu1  ;;  %v927_v36 = vpop.f32.mrf.mxu0 }
 0x1f2   :  { %v207_v38 = vpop.f32.mrf.mxu0 }
 0x1f4   :  { %v930_v40 = vpop.f32.mrf.mxu0 }
 0x1f6   :  { %v217_v45 = vpop.f32.mrf.mxu0 }
 0x255   :  { %v592_v60 = vpop.xlane.xlu1 %591 }
 0x256   :  { %v623_v4 = vadd.f32 %v988_v59, %v592_v60 }
 0x258   :  { %989 = vlog2.f32 %v623_v4 }
 0x25c   :  { %v824_v46 = vpop.xlane.xlu0 %823 }
 0x265   :  { %v990_v5 = vpop.eup %989 }
 0x266   :  { %v640_v21 = vmul.f32 0.6931472, %v990_v5 }
 0x268   :  { %v687_v9 = vadd.f32 %v640_v21, %v1135_v43  ;;  %v825_v43 = vrot.slane %v824_v46, 4 }
 0x26a   :  { %v703_v10 = vsel %vm671_vm3, %v687_v9, 0.0  ;;  %v826_v49 = vadd.f32 %v825_v43, %v824_v46 }
 0x26b   :  { %v720_v26 = vsel %vm719_vm4, %v703_v10, 0.0 }
 0x26c   :  { %751 = vadd.xlane.f32.xlu1 %v720_v26  ;;  %v827_v50 = vrot.slane %v826_v49, 2 }
 0x26e   :  { %v828_v56 = vadd.f32 %v827_v50, %v826_v49 }
 0x270   :  { %v829_v61 = vrot.slane %v828_v56, 1 }
 0x272   :  { %v830_v0 = vadd.f32 %v829_v61, %v828_v56 }
 0x280   :  { %v939_v37 = vpop.f32.mrf.mxu1 }
 0x282   :  { %v247_v39 = vpop.f32.mrf.mxu1 }
 0x28f   :  { %v942_v44 = vpop.f32.mrf.mxu1 }
 0x291   :  { %v257_v32 = vpop.f32.mrf.mxu1 }
 0x2f5   :  { %v752_v51 = vpop.xlane.xlu1 %751 }
 0x2f6   :  { %v753_v52 = vrot.slane %v752_v51, 4 }
 0x2f8   :  { %v754_v55 = vadd.f32 %v753_v52, %v752_v51 }
 0x2fa   :  { %v755_v57 = vrot.slane %v754_v55, 2 }
 0x2fc   :  { %v756_v58 = vadd.f32 %v755_v57, %v754_v55 }
 0x2fe   :  { %v757_v62 = vrot.slane %v756_v58, 1 }
 0x300   :  { %v758_v63 = vadd.f32 %v757_v62, %v756_v58 }
 0x302   :  { %975 = vpush %v758_v63 }
 0x303   :  { %977 = vpush %v830_v0 }
 0x333   :  { %s976_s0 = spop %975 }
 0x334   :  { %v836_v1 = vstv %s976_s0  ;;  %s978_s29 = spop %977 }
 0x335   :  { %v834_v2 = vstv %s978_s29 }
 0x336   :  { %v835_v3 = vsel %vm833_vm5, %v834_v2, 0.0 }
 0x337   :  { %v837_v6 = vsel %vm832_vm6, %v836_v1, %v835_v3 }
 0x338   :  { %838 = vst [vmem:[#allocation8] sm:$0x1] %v837_v6 }
 0x339   :  { %1062 = shalt.err (!%p1059_p5)
}
 0x33a   :  { %848 = dma.vmem_to_hbm [thread:$0]  %s846_s28, 16, %s1206_s3, [#allocation4]  }
 0x33b   :  { %1075 = dma.done.wait [#allocation4], 16  }
 0x33c   :  { %1076 = vsyncadd [#allocation4], 4294967280 }
 0x33d   :  { %852 = vsyncpa [#allocation3], 1 }
 0x33e   :  { %853 = vsyncpa [#allocation6], 1 }
 0x33f   :  { %854 = vsyncpa [#allocation4], 1 }

// kernel: tpu_custom_call.1
= control target key start
LH: loop header
LB: loop body
LE: loop exit
PB: predicated region body
PF: predicated region fallthrough
CT: control target
= control target key end

     0   :  { %8 = vsyncpa [#allocation3], 0  ;;  %s1203_s0 = inlined_call_operand.hbm [shape: f32[128,128], index: 0, kind: input, shape index: {}]   ;;  %s1204_s1 = inlined_call_operand.hbm [shape: f32[128,128], index: 1, kind: input, shape index: {}]   ;;  %s1205_s2 = inlined_call_operand.hbm [shape: f32[128,128], index: 2, kind: input, shape index: {}]   ;;  %s1206_s3 = inlined_call_operand.hbm [shape: f32[1,1,128], index: 3, kind: output, shape index: {}]  }
   0x1   :  { %9 = vsyncpa [#allocation6], 0 }
   0x2   :  { %10 = vsyncpa [#allocation4], 0  ;;  %s1077_s12 = smov [#allocation5]   ;;  %s1078_s14 = smov [#allocation2]  }
   0x3   :  { %s28_s13 = sshll.u32 %s1077_s12, 4  ;;  %s16_s15 = sshll.u32 %s1078_s14, 4  ;;  %s29_s13 = int_to_ptr.vmem [resolvable:$true] %s28_s13  ;;  %s17_s15 = int_to_ptr.vmem [resolvable:$true] %s16_s15 }
   0x4   :  { %s999_s16 = scalar_lea.vmem %s29_s13, 2048  ;;  %p1004_p1 = scmp.lt.s32.totalorder %s29_s13, %s29_s13 }
   0x5   :  { %p1000_p0 = scmp.ne.s32.totalorder %s29_s13, %s999_s16  ;;  %p1005_p2 = scmp.lt.s32.totalorder %s999_s16, %s999_s16 }
   0x7   :  { %p1006_p3 = por %p1005_p2, %p1004_p1 }
   0x9   :  { %p1007_p4 = pnand %p1006_p3, %p1000_p0 }
   0xb   :  { %1010 = shalt.err (!%p1007_p4)
}
   0xc   :  { %s1079_s17 = smov 128   ;;  %s1080_s18 = smov 8  }
   0xd   :  { %34 = dma.hbm_to_vmem [thread:$0]  %s1204_s1, 2048, %s29_s13, [#allocation6], %s1079_s17, %s1079_s17, %s1080_s18  }
   0xe   :  { %s1019_s21 = scalar_lea.vmem %s17_s15, 2048  ;;  %p1024_p6 = scmp.lt.s32.totalorder %s17_s15, %s17_s15 }
   0xf   :  { %p1020_p5 = scmp.ne.s32.totalorder %s17_s15, %s1019_s21  ;;  %p1025_p7 = scmp.lt.s32.totalorder %s1019_s21, %s1019_s21 }
  0x11   :  { %p1026_p8 = por %p1025_p7, %p1024_p6 }
  0x13   :  { %p1027_p9 = pnand %p1026_p8, %p1020_p5 }
  0x15   :  { %1030 = shalt.err (!%p1027_p9)
}
  0x16   :  { %22 = dma.hbm_to_vmem [thread:$0]  %s1203_s0, 2048, %s17_s15, [#allocation3], %s1079_s17, %s1079_s17, %s1080_s18  }
  0x17   :  { %s1081_s24 = smov [#allocation7]  }
  0x18   :  { %s40_s25 = sshll.u32 %s1081_s24, 4  ;;  %s41_s25 = int_to_ptr.vmem [resolvable:$true] %s40_s25 }
  0x19   :  { %s1039_s26 = scalar_lea.vmem %s41_s25, 2048  ;;  %p1044_p11 = scmp.lt.s32.totalorder %s41_s25, %s41_s25 }
  0x1a   :  { %p1040_p10 = scmp.ne.s32.totalorder %s41_s25, %s1039_s26  ;;  %p1045_p12 = scmp.lt.s32.totalorder %s1039_s26, %s1039_s26 }
  0x1c   :  { %p1046_p13 = por %p1045_p12, %p1044_p11 }
  0x1e   :  { %p1047_p0 = pnand %p1046_p13, %p1040_p10 }
  0x20   :  { %1050 = shalt.err (!%p1047_p0)
}
  0x21   :  { %46 = dma.hbm_to_vmem [thread:$0]  %s1205_s2, 2048, %s41_s25, [#allocation6], %s1079_s17, %s1079_s17, %s1080_s18  }
  0x22   :  { %1071 = dma.done.wait [#allocation3], 2048  }
  0x23   :  { %1072 = vsyncadd [#allocation3], 4294965248 }
  0x24   :  { %1073 = dma.done.wait [#allocation6], 4096  }
  0x25   :  { %1074 = vsyncadd [#allocation6], 4294963200  ;;  %v104_v0 = vld [vmem:[#allocation7 + $0x78] sm:$0xff]  ;;  %v103_v1 = vld [vmem:[#allocation7 + $0x70] sm:$0xff]  ;;  %v362_v30 = vlaneseq  ;;  %vm719_vm4 = vcmask 7168   ;;  %s1082_s2 = smov [#allocation8]  }
  0x26   :  { %887 = vmatprep.subr.mxu0 %v104_v0  ;;  %943 = vmatprep.subr.mxu1 %v104_v0  ;;  %v102_v2 = vld [vmem:[#allocation7 + $0x68] sm:$0xff]  ;;  %v57_v3 = vld [vmem:[#allocation2] sm:$0xff]  ;;  %v100_v16 = vld [vmem:[#allocation7 + $0x58] sm:$0xff]  ;;  %s845_s28 = sshll.u32 %s1082_s2, 4  ;;  %s846_s28 = int_to_ptr.vmem [resolvable:$true] %s845_s28 }
  0x27   :  { %888 = vmatpush3.xpose.msra.mxu0 %v104_v0  ;;  %959 = vmatpush3.xpose.msra.mxu1 %v104_v0  ;;  %v73_v4 = vld [vmem:[#allocation5] sm:$0xff]  ;;  %v760_v6 = vmul.f32 %v57_v3, %v57_v3  ;;  %v1112_v8 = vld [vmem:[#allocation2 + $0x8] sm:$0xff]  ;;  %v99_v18 = vld [vmem:[#allocation7 + $0x50] sm:$0xff]  ;;  %v1124_v31 = vand.u32 127, %v362_v30  ;;  %v1126_v32 = vshrl.u32 %v362_v30, 7  ;;  %s1051_s30 = scalar_lea.vmem %s846_s28, 16  ;;  %p1056_p2 = scmp.lt.s32.totalorder %s846_s28, %s846_s28 }
  0x28   :  { %889 = vmatprep.subr.mxu0 %v103_v1  ;;  %944 = vmatprep.subr.mxu1 %v103_v1  ;;  %v105_v5 = vadd.f32 %v73_v4, %v57_v3  ;;  %v776_v7 = vmul.f32 %v73_v4, %v73_v4  ;;  %v266_v9 = vmul.f32 %v73_v4, %v57_v3  ;;  %v101_v11 = vld [vmem:[#allocation7 + $0x60] sm:$0xff]  ;;  %v1116_v13 = vld [vmem:[#allocation5 + $0x8] sm:$0xff]  ;;  %v96_v21 = vld [vmem:[#allocation7 + $0x38] sm:$0xff]  ;;  %p1052_p1 = scmp.ne.s32.totalorder %s846_s28, %s1051_s30  ;;  %s1055_s4 = scalar_lea.vmem %s846_s28, 32 }
  0x29   :  { %v761_v10 = vmul.f32 %v1112_v8, %v1112_v8  ;;  %v777_v14 = vmul.f32 %v1116_v13, %v1116_v13  ;;  %v98_v19 = vld [vmem:[#allocation7 + $0x48] sm:$0xff]  ;;  %v97_v20 = vld [vmem:[#allocation7 + $0x40] sm:$0xff]  ;;  %v95_v22 = vld [vmem:[#allocation7 + $0x30] sm:$0xff]  ;;  %v106_v29 = vadd.f32 %v1116_v13, %v1112_v8  ;;  %vm364_vm0 = vcmp.lt.s32.totalorder %v1124_v31, 4  ;;  %p1057_p3 = scmp.lt.s32.totalorder %s1055_s4, %s1051_s30 }
  0x2a   :  { %919 = vmatprep.mubr.f32.mxu0 %v105_v5  ;;  %v792_v12 = vadd.f32 %v776_v7, %v760_v6  ;;  %282 = vadd.xlane.f32.xlu0 %v266_v9  ;;  %v94_v23 = vld [vmem:[#allocation7 + $0x28] sm:$0xff]  ;;  %v93_v24 = vld [vmem:[#allocation7 + $0x20] sm:$0xff]  ;;  %v92_v25 = vld [vmem:[#allocation7 + $0x18] sm:$0xff]  ;;  %vm399_vm1 = vcmp.ne.s32.totalorder %v1124_v31, %v1126_v32  ;;  %vm671_vm3 = vcmp.lt.s32.totalorder %v1126_v32, 4  ;;  %vm833_vm5 = vcmp.eq.s32.totalorder %v1124_v31, 1 }
  0x2b   :  { %890 = vmatpush3.xpose.msra.mxu0 %v103_v1  ;;  %960 = vmatpush3.xpose.msra.mxu1 %v103_v1  ;;  %v793_v15 = vadd.f32 %v777_v14, %v761_v10  ;;  %v91_v26 = vld [vmem:[#allocation7 + $0x10] sm:$0xff]  ;;  %v90_v27 = vld [vmem:[#allocation7 + $0x8] sm:$0xff]  ;;  %v89_v28 = vld [vmem:[#allocation7] sm:$0xff]  ;;  %vm832_vm6 = vcmp.eq.s32.totalorder %v1124_v31, 0  ;;  %p1058_p4 = por %p1057_p3, %p1056_p2 }
  0x2c   :  { %891 = vmatprep.subr.mxu0 %v102_v2  ;;  %945 = vmatprep.subr.mxu1 %v102_v2  ;;  %vm415_vm2 = vmand %vm364_vm0, %vm399_vm1  ;;  %v1131_v41 = vld [vmem:[#allocation2 + $0x10] sm:$0xff]  ;;  %v1142_v47 = vld [vmem:[#allocation2 + $0x18] sm:$0xff] }
  0x2d   :  { %v1120_v17 = vadd.f32 %v793_v15, %v792_v12  ;;  %v1133_v42 = vld [vmem:[#allocation5 + $0x10] sm:$0xff]  ;;  %v762_v45 = vmul.f32 %v1131_v41, %v1131_v41  ;;  %v1144_v48 = vld [vmem:[#allocation5 + $0x18] sm:$0xff]  ;;  %v763_v50 = vmul.f32 %v1142_v47, %v1142_v47  ;;  %v1150_v53 = vld [vmem:[#allocation2 + $0x20] sm:$0xff]  ;;  %p1059_p5 = pnand %p1058_p4, %p1052_p1 }
  0x2e   :  { %v778_v46 = vmul.f32 %v1133_v42, %v1133_v42  ;;  %v779_v51 = vmul.f32 %v1144_v48, %v1144_v48  ;;  %v1152_v54 = vld [vmem:[#allocation5 + $0x20] sm:$0xff]  ;;  %v764_v55 = vmul.f32 %v1150_v53, %v1150_v53  ;;  %v1159_v59 = vld [vmem:[#allocation2 + $0x28] sm:$0xff]  ;;  %v1167_v4 = vld [vmem:[#allocation2 + $0x30] sm:$0xff] }
  0x2f   :  { %892 = vmatpush3.xpose.msra.mxu0 %v102_v2  ;;  %961 = vmatpush3.xpose.msra.mxu1 %v102_v2  ;;  %v780_v56 = vmul.f32 %v1152_v54, %v1152_v54  ;;  %v1161_v60 = vld [vmem:[#allocation5 + $0x28] sm:$0xff]  ;;  %v765_v61 = vmul.f32 %v1159_v59, %v1159_v59  ;;  %v1169_v5 = vld [vmem:[#allocation5 + $0x30] sm:$0xff]  ;;  %v766_v7 = vmul.f32 %v1167_v4, %v1167_v4  ;;  %v1175_v9 = vld [vmem:[#allocation2 + $0x38] sm:$0xff] }
  0x30   :  { %893 = vmatprep.subr.mxu0 %v101_v11  ;;  %946 = vmatprep.subr.mxu1 %v101_v11  ;;  %v794_v52 = vadd.f32 %v778_v46, %v762_v45  ;;  %v795_v57 = vadd.f32 %v779_v51, %v763_v50  ;;  %v781_v62 = vmul.f32 %v1161_v60, %v1161_v60  ;;  %v1177_v10 = vld [vmem:[#allocation5 + $0x38] sm:$0xff]  ;;  %v65_v14 = vld [vmem:[#allocation2 + $0x40] sm:$0xff]  ;;  %v70_v51 = vld [vmem:[#allocation2 + $0x68] sm:$0xff] }
  0x31   :  { %v796_v63 = vadd.f32 %v780_v56, %v764_v55  ;;  %v782_v8 = vmul.f32 %v1169_v5, %v1169_v5  ;;  %v783_v12 = vmul.f32 %v1177_v10, %v1177_v10  ;;  %v81_v15 = vld [vmem:[#allocation5 + $0x40] sm:$0xff]  ;;  %v773_v55 = vmul.f32 %v70_v51, %v70_v51 }
  0x32   :  { %v809_v58 = vadd.f32 %v1120_v17, %v794_v52  ;;  %v797_v1 = vadd.f32 %v781_v62, %v765_v61  ;;  %v784_v17 = vmul.f32 %v81_v15, %v81_v15  ;;  %v86_v52 = vld [vmem:[#allocation5 + $0x68] sm:$0xff]  ;;  %v71_v61 = vld [vmem:[#allocation2 + $0x70] sm:$0xff] }
  0x33   :  { %894 = vmatpush3.xpose.msra.mxu0 %v101_v11  ;;  %962 = vmatpush3.xpose.msra.mxu1 %v101_v11  ;;  %v767_v11 = vmul.f32 %v1175_v9, %v1175_v9  ;;  %v798_v13 = vadd.f32 %v782_v8, %v766_v7  ;;  %v789_v56 = vmul.f32 %v86_v52, %v86_v52  ;;  %v87_v62 = vld [vmem:[#allocation5 + $0x70] sm:$0xff] }
  0x34   :  { %895 = vmatprep.subr.mxu0 %v100_v16  ;;  %947 = vmatprep.subr.mxu1 %v100_v16  ;;  %v810_v0 = vadd.f32 %v809_v58, %v795_v57 }
  0x36   :  { %v811_v2 = vadd.f32 %v810_v0, %v796_v63  ;;  %v774_v63 = vmul.f32 %v71_v61, %v71_v61  ;;  %v790_v0 = vmul.f32 %v87_v62, %v87_v62 }
  0x37   :  { %896 = vmatpush3.xpose.msra.mxu0 %v100_v16  ;;  %963 = vmatpush3.xpose.msra.mxu1 %v100_v16  ;;  %v768_v16 = vmul.f32 %v65_v14, %v65_v14 }
  0x38   :  { %897 = vmatprep.subr.mxu0 %v99_v18  ;;  %948 = vmatprep.subr.mxu1 %v99_v18  ;;  %v812_v6 = vadd.f32 %v811_v2, %v797_v1  ;;  %v805_v1 = vadd.f32 %v789_v56, %v773_v55 }
  0x3b   :  { %898 = vmatpush3.xpose.msra.mxu0 %v99_v18  ;;  %964 = vmatpush3.xpose.msra.mxu1 %v99_v18  ;;  %v799_v18 = vadd.f32 %v783_v12, %v767_v11  ;;  %v806_v11 = vadd.f32 %v790_v0, %v774_v63 }
  0x3c   :  { %899 = vmatprep.subr.mxu0 %v98_v19  ;;  %949 = vmatprep.subr.mxu1 %v98_v19 }
  0x3f   :  { %900 = vmatpush3.xpose.msra.mxu0 %v98_v19  ;;  %965 = vmatpush3.xpose.msra.mxu1 %v98_v19  ;;  %v813_v19 = vadd.f32 %v812_v6, %v798_v13  ;;  %v88_v6 = vld [vmem:[#allocation5 + $0x78] sm:$0xff] }
  0x40   :  { %901 = vmatprep.subr.mxu0 %v97_v20  ;;  %950 = vmatprep.subr.mxu1 %v97_v20  ;;  %v791_v8 = vmul.f32 %v88_v6, %v88_v6 }
  0x43   :  { %902 = vmatpush3.xpose.msra.mxu0 %v97_v20  ;;  %966 = vmatpush3.xpose.msra.mxu1 %v97_v20  ;;  %v66_v20 = vld [vmem:[#allocation2 + $0x48] sm:$0xff] }
  0x44   :  { %903 = vmatprep.subr.mxu0 %v96_v21  ;;  %951 = vmatprep.subr.mxu1 %v96_v21 }
  0x47   :  { %904 = vmatpush3.xpose.msra.mxu0 %v96_v21  ;;  %967 = vmatpush3.xpose.msra.mxu1 %v96_v21  ;;  %v82_v21 = vld [vmem:[#allocation5 + $0x48] sm:$0xff] }
  0x48   :  { %905 = vmatprep.subr.mxu0 %v95_v22  ;;  %952 = vmatprep.subr.mxu1 %v95_v22 }
  0x4b   :  { %906 = vmatpush3.xpose.msra.mxu0 %v95_v22  ;;  %968 = vmatpush3.xpose.msra.mxu1 %v95_v22  ;;  %v769_v22 = vmul.f32 %v66_v20, %v66_v20 }
  0x4c   :  { %907 = vmatprep.subr.mxu0 %v94_v23  ;;  %953 = vmatprep.subr.mxu1 %v94_v23 }
  0x4f   :  { %908 = vmatpush3.xpose.msra.mxu0 %v94_v23  ;;  %969 = vmatpush3.xpose.msra.mxu1 %v94_v23  ;;  %v785_v23 = vmul.f32 %v82_v21, %v82_v21 }
  0x50   :  { %909 = vmatprep.subr.mxu0 %v93_v24  ;;  %954 = vmatprep.subr.mxu1 %v93_v24 }
  0x51   :  { %v801_v30 = vadd.f32 %v785_v23, %v769_v22  ;;  %v107_v22 = vadd.f32 %v1133_v42, %v1131_v41  ;;  %v111_v41 = vadd.f32 %v1169_v5, %v1167_v4  ;;  %v119_v42 = vadd.f32 %v87_v62, %v71_v61 }
  0x53   :  { %910 = vmatpush3.xpose.msra.mxu0 %v93_v24  ;;  %970 = vmatpush3.xpose.msra.mxu1 %v93_v24  ;;  %v800_v24 = vadd.f32 %v784_v17, %v768_v16 }
  0x54   :  { %911 = vmatprep.subr.mxu0 %v92_v25  ;;  %955 = vmatprep.subr.mxu1 %v92_v25 }
  0x57   :  { %912 = vmatpush3.xpose.msra.mxu0 %v92_v25  ;;  %971 = vmatpush3.xpose.msra.mxu1 %v92_v25  ;;  %v814_v25 = vadd.f32 %v813_v19, %v799_v18  ;;  %v113_v18 = vadd.f32 %v81_v15, %v65_v14  ;;  %v114_v19 = vadd.f32 %v82_v21, %v66_v20 }
  0x58   :  { %913 = vmatprep.subr.mxu0 %v91_v26  ;;  %956 = vmatprep.subr.mxu1 %v91_v26  ;;  %v110_v15 = vadd.f32 %v1161_v60, %v1159_v59  ;;  %v118_v20 = vadd.f32 %v86_v52, %v70_v51 }
  0x59   :  { %931 = vmatprep.mubr.f32.mxu1 %v113_v18 }
  0x5b   :  { %914 = vmatpush3.xpose.msra.mxu0 %v91_v26  ;;  %972 = vmatpush3.xpose.msra.mxu1 %v91_v26  ;;  %v67_v26 = vld [vmem:[#allocation2 + $0x50] sm:$0xff] }
  0x5c   :  { %915 = vmatprep.subr.mxu0 %v90_v27  ;;  %957 = vmatprep.subr.mxu1 %v90_v27 }
  0x5f   :  { %916 = vmatpush3.xpose.msra.mxu0 %v90_v27  ;;  %973 = vmatpush3.xpose.msra.mxu1 %v90_v27  ;;  %v83_v27 = vld [vmem:[#allocation5 + $0x50] sm:$0xff] }
  0x60   :  { %917 = vmatprep.subr.mxu0 %v89_v28  ;;  %958 = vmatprep.subr.mxu1 %v89_v28  ;;  %v115_v23 = vadd.f32 %v83_v27, %v67_v26 }
  0x63   :  { %918 = vmatpush3.xpose.msra.mxu0 %v89_v28  ;;  %974 = vmatpush3.xpose.msra.mxu1 %v89_v28  ;;  %v770_v28 = vmul.f32 %v67_v26, %v67_v26 }
  0x66   :  { %920 = vmatmul.mubr.f32.vlgmr.msra.gmra.mxu0 %v106_v29  ;;  %v786_v29 = vmul.f32 %v83_v27, %v83_v27  ;;  %932 = vmatmul.mubr.f32.vlgmr.msra.gmra.mxu1 %v114_v19 }
  0x67   :  { %922 = vmatprep.mubr.f32.mxu0 %v107_v22  ;;  %934 = vmatprep.mubr.f32.mxu1 %v115_v23 }
  0xb3   :  { %v283_v33 = vpop.xlane.xlu0 %282 }
  0xb4   :  { %v330_v35 = vmul.f32 4.0, %v283_v33  ;;  %v815_v33 = vadd.f32 %v814_v25, %v800_v24  ;;  %v108_v24 = vadd.f32 %v1144_v48, %v1142_v47  ;;  %v112_v47 = vadd.f32 %v1177_v10, %v1175_v9 }
  0xb6   :  { %923 = vmatmul.mubr.f32.gmra.mxu0 %v108_v24 }
 0x126   :  { %v921_v34 = vpop.f32.mrf.mxu0  ;;  %v933_v27 = vpop.f32.mrf.mxu1 }
 0x127   :  { %v68_v34 = vld [vmem:[#allocation2 + $0x58] sm:$0xff] }
 0x128   :  { %v187_v36 = vpop.f32.mrf.mxu0 }
 0x129   :  { %v314_v37 = vmul.f32 4.0, %v187_v36  ;;  %v771_v36 = vmul.f32 %v68_v34, %v68_v34 }
 0x12b   :  { %v346_v38 = vsub.f32 %v314_v37, %v330_v35  ;;  %v84_v35 = vld [vmem:[#allocation5 + $0x58] sm:$0xff] }
 0x12c   :  { %v787_v37 = vmul.f32 %v84_v35, %v84_v35  ;;  %v116_v25 = vadd.f32 %v84_v35, %v68_v34 }
 0x12d   :  { %v431_v39 = vsel %vm415_vm2, %v346_v38, -1e+30  ;;  %v802_v38 = vadd.f32 %v786_v29, %v770_v28  ;;  %v109_v28 = vadd.f32 %v1152_v54, %v1150_v53 }
 0x12e   :  { %447 = vmax.xlane.f32.xlu0 %v431_v39  ;;  %935 = vmatmul.mubr.f32.gmra.mxu1 %v116_v25 }
 0x12f   :  { %925 = vmatprep.mubr.f32.mxu0 %v109_v28 }
 0x130   :  { %926 = vmatmul.mubr.f32.gmra.mxu0 %v110_v15 }
 0x131   :  { %928 = vmatprep.mubr.f32.mxu0 %v111_v41 }
 0x134   :  { %929 = vmatmul.mubr.f32.gmra.mxu0 %v112_v47 }
 0x176   :  { %v924_v29 = vpop.f32.mrf.mxu0 }
 0x1b7   :  { %v448_v40 = vpop.xlane.xlu0 %447 }
 0x1b8   :  { %v1135_v43 = vmax.f32 %v448_v40, 0.0  ;;  %v69_v40 = vld [vmem:[#allocation2 + $0x60] sm:$0xff] }
 0x1b9   :  { %v772_v45 = vmul.f32 %v69_v40, %v69_v40 }
 0x1ba   :  { %v543_v44 = vsub.f32 %v431_v39, %v1135_v43  ;;  %v816_v39 = vadd.f32 %v815_v33, %v801_v30  ;;  %v495_v53 = vsub.f32 0.0, %v1135_v43  ;;  %v227_v30 = vpop.f32.mrf.mxu1  ;;  %v197_v33 = vpop.f32.mrf.mxu0 }
 0x1bc   :  { %v559_v49 = vmul.f32 1.442695, %v543_v44  ;;  %v85_v44 = vld [vmem:[#allocation5 + $0x60] sm:$0xff]  ;;  %v817_v50 = vadd.f32 %v816_v39, %v802_v38  ;;  %v511_v54 = vmul.f32 1.442695, %v495_v53 }
 0x1bd   :  { %v788_v46 = vmul.f32 %v85_v44, %v85_v44  ;;  %v117_v14 = vadd.f32 %v85_v44, %v69_v40 }
 0x1be   :  { %985 = vpow2.f32 %v559_v49  ;;  %v803_v49 = vadd.f32 %v787_v37, %v771_v36 }
 0x1bf   :  { %v804_v57 = vadd.f32 %v788_v46, %v772_v45  ;;  %937 = vmatprep.mubr.f32.mxu1 %v117_v14  ;;  %987 = vpow2.f32 %v511_v54 }
 0x1c0   :  { %v818_v58 = vadd.f32 %v817_v50, %v803_v49  ;;  %938 = vmatmul.mubr.f32.gmra.mxu1 %v118_v20 }
 0x1c1   :  { %940 = vmatprep.mubr.f32.mxu1 %v119_v42 }
 0x1c2   :  { %v819_v2 = vadd.f32 %v818_v58, %v804_v57 }
 0x1c4   :  { %v820_v12 = vadd.f32 %v819_v2, %v805_v1 }
 0x1c6   :  { %v821_v16 = vadd.f32 %v820_v12, %v806_v11 }
 0x1cb   :  { %v986_v3 = vpop.eup %985 }
 0x1cc   :  { %591 = vadd.xlane.f32.xlu1 %v986_v3  ;;  %v72_v3 = vld [vmem:[#allocation2 + $0x78] sm:$0xff]  ;;  %v988_v59 = vpop.eup %987 }
 0x1cd   :  { %v775_v7 = vmul.f32 %v72_v3, %v72_v3  ;;  %v120_v48 = vadd.f32 %v88_v6, %v72_v3 }
 0x1cf   :  { %v807_v13 = vadd.f32 %v791_v8, %v775_v7  ;;  %941 = vmatmul.mubr.f32.gmra.mxu1 %v120_v48 }
 0x1d1   :  { %v822_v17 = vadd.f32 %v821_v16, %v807_v13 }
 0x1d3   :  { %823 = vadd.xlane.f32.xlu0 %v822_v17 }
 0x1ee   :  { %v936_v34 = vpop.f32.mrf.mxu1 }
 0x1f0   :  { %v237_v35 = vpop.f32.mrf.mxu1  ;;  %v927_v36 = vpop.f32.mrf.mxu0 }
 0x1f2   :  { %v207_v38 = vpop.f32.mrf.mxu0 }
 0x1f4   :  { %v930_v40 = vpop.f32.mrf.mxu0 }
 0x1f6   :  { %v217_v45 = vpop.f32.mrf.mxu0 }
 0x255   :  { %v592_v60 = vpop.xlane.xlu1 %591 }
 0x256   :  { %v623_v4 = vadd.f32 %v988_v59, %v592_v60 }
 0x258   :  { %989 = vlog2.f32 %v623_v4 }
 0x25c   :  { %v824_v46 = vpop.xlane.xlu0 %823 }
 0x265   :  { %v990_v5 = vpop.eup %989 }
 0x266   :  { %v640_v21 = vmul.f32 0.6931472, %v990_v5 }
 0x268   :  { %v687_v9 = vadd.f32 %v640_v21, %v1135_v43  ;;  %v825_v43 = vrot.slane %v824_v46, 4 }
 0x26a   :  { %v703_v10 = vsel %vm671_vm3, %v687_v9, 0.0  ;;  %v826_v49 = vadd.f32 %v825_v43, %v824_v46 }
 0x26b   :  { %v720_v26 = vsel %vm719_vm4, %v703_v10, 0.0 }
 0x26c   :  { %751 = vadd.xlane.f32.xlu1 %v720_v26  ;;  %v827_v50 = vrot.slane %v826_v49, 2 }
 0x26e   :  { %v828_v56 = vadd.f32 %v827_v50, %v826_v49 }
 0x270   :  { %v829_v61 = vrot.slane %v828_v56, 1 }
 0x272   :  { %v830_v0 = vadd.f32 %v829_v61, %v828_v56 }
 0x280   :  { %v939_v37 = vpop.f32.mrf.mxu1 }
 0x282   :  { %v247_v39 = vpop.f32.mrf.mxu1 }
 0x28f   :  { %v942_v44 = vpop.f32.mrf.mxu1 }
 0x291   :  { %v257_v32 = vpop.f32.mrf.mxu1 }
 0x2f5   :  { %v752_v51 = vpop.xlane.xlu1 %751 }
 0x2f6   :  { %v753_v52 = vrot.slane %v752_v51, 4 }
 0x2f8   :  { %v754_v55 = vadd.f32 %v753_v52, %v752_v51 }
 0x2fa   :  { %v755_v57 = vrot.slane %v754_v55, 2 }
 0x2fc   :  { %v756_v58 = vadd.f32 %v755_v57, %v754_v55 }
 0x2fe   :  { %v757_v62 = vrot.slane %v756_v58, 1 }
 0x300   :  { %v758_v63 = vadd.f32 %v757_v62, %v756_v58 }
 0x302   :  { %975 = vpush %v758_v63 }
 0x303   :  { %977 = vpush %v830_v0 }
 0x333   :  { %s976_s0 = spop %975 }
 0x334   :  { %v836_v1 = vstv %s976_s0  ;;  %s978_s29 = spop %977 }
 0x335   :  { %v834_v2 = vstv %s978_s29 }
 0x336   :  { %v835_v3 = vsel %vm833_vm5, %v834_v2, 0.0 }
 0x337   :  { %v837_v6 = vsel %vm832_vm6, %v836_v1, %v835_v3 }
 0x338   :  { %838 = vst [vmem:[#allocation8] sm:$0x1] %v837_v6 }
 0x339   :  { %1062 = shalt.err (!%p1059_p5)
}
 0x33a   :  { %848 = dma.vmem_to_hbm [thread:$0]  %s846_s28, 16, %s1206_s3, [#allocation4]  }
 0x33b   :  { %1075 = dma.done.wait [#allocation4], 16  }
 0x33c   :  { %1076 = vsyncadd [#allocation4], 4294967280 }
 0x33d   :  { %852 = vsyncpa [#allocation3], 1 }
 0x33e   :  { %853 = vsyncpa [#allocation6], 1 }
 0x33f   :  { %854 = vsyncpa [#allocation4], 1 }

</bundles_post_ra>
